<compile_context>
chip_gen: v6e
topology: v6e:2x2x1
jax: 0.10.0
libtpu: 0.0.40
codegen_flags: <defaults>
</compile_context>

<pallas_src>
import jax
import jax.numpy as jnp
from jax.experimental import pallas as pl
from jax.experimental.pallas import tpu as pltpu


# ---------------------------------------------------------------------------
# Fused kernel: clamp + blend + per-row target-logit (multiply + lane reduce)
# ---------------------------------------------------------------------------
def _fused_kernel(mask_ref, x_ref, base_ref, wg_ref, bg_ref, out_ref):
    m = jnp.clip(mask_ref[...], 0.0, 1.0)        # (TB, D)
    x = x_ref[...]                               # (TB, D)
    b = base_ref[...]                            # (TB, D)
    wg = wg_ref[...]                             # (TB, D)  W[:, target[row]] per row
    bg = bg_ref[0, :]                            # (TB,)    bias[target[row]]

    one_minus_m = 1.0 - m
    # Blend kept in f32 (v5e's VPU has no bf16 VALU); never written back to HBM.
    x1 = x * m + b * one_minus_m
    x2 = x * one_minus_m + b * m

    # Target logit per row: elementwise multiply + lane-axis (XLU) reduction.
    l1 = jnp.sum(x1 * wg, axis=-1) + bg          # (TB,)
    l2 = jnp.sum(x2 * wg, axis=-1) + bg          # (TB,)

    # Lane-dense (2, TB) output block: batch on the lane axis.
    out_ref[0, :] = l1
    out_ref[1, :] = l2


def _round_up(v, m):
    return ((v + m - 1) // m) * m


def mc_extremal_mask_forward(mask, x, baselines, batch_idx, batch_size, W, bias, target):
    """Fused forward.  mask: (N, Tm, F); x, baselines: (B, T, F); W: (T*F, C); bias: (1, C)."""
    # TODO(synk): `self.model(x - baselines)` path (arbitrary nn.Module) is not
    # supported; the default model=None path is implemented.
    B, T, F = x.shape
    N, Tm, Fm = mask.shape
    assert Fm == F and Tm >= T
    D = T * F
    Dw, C = W.shape
    assert Dw == D

    # Module's mask row-window + time truncation.  Pre-slicing in the wrapper
    # keeps the kernel index_map identical to x's and independent of whether
    # batch_size * batch_idx is aligned to the row tile.
    row0 = batch_size * batch_idx
    mask_b = mask[row0:row0 + B, :T, :]

    # Lane-dense 2-D layout (rows, D); makes the classifier flatten a no-op.
    mask2 = mask_b.reshape(B, D)
    x2 = x.reshape(B, D)
    base2 = baselines.reshape(B, D)

    # Pre-gather the per-example target column of W and target bias (tiny XLA
    # gathers); removes the full-C matmul and the in-kernel logit select.
    tgt = target.astype(jnp.int32)
    wg = jnp.take(W, tgt, axis=1).T              # (B, D)
    bg = jnp.take(bias[0], tgt).reshape(1, B)    # (1, B)

    # Row tile: multiple of 8 (sublane-dense); multiple of 128 whenever the
    # grid has >1 step so the (2, TB) output block stays lane-dense.
    # TODO(synk): at much larger D, re-derive TB against the VMEM budget and
    # cast the streamed operands to bf16 (keep the blend in f32).
    MAX_TB = 512
    TB = _round_up(B, 8) if B <= MAX_TB else MAX_TB
    B_pad = _round_up(B, TB)

    if B_pad > B:
        pad = B_pad - B
        mask2 = jnp.pad(mask2, ((0, pad), (0, 0)))
        x2 = jnp.pad(x2, ((0, pad), (0, 0)))
        base2 = jnp.pad(base2, ((0, pad), (0, 0)))
        wg = jnp.pad(wg, ((0, pad), (0, 0)))
        bg = jnp.pad(bg, ((0, 0), (0, pad)))

    grid = (B_pad // TB,)
    row_spec = pl.BlockSpec((TB, D), lambda i: (i, 0))

    # Double-buffered f32 tile footprint (+ margin); stays below v7x's 64 MiB
    # physical VMEM, raises v5e's 16 MiB scoped default only when needed.
    vmem_need = 2 * (4 * TB * D + 3 * TB) * 4 + (2 << 20)
    vmem_limit = int(min(max(vmem_need, 16 << 20), 48 << 20))

    out = pl.pallas_call(
        _fused_kernel,
        grid=grid,
        in_specs=[
            row_spec,                                   # mask (pre-sliced window)
            row_spec,                                   # x
            row_spec,                                   # baselines
            row_spec,                                   # gathered W[:, target] rows
            pl.BlockSpec((1, TB), lambda i: (0, i)),    # gathered bias[target]
        ],
        out_specs=pl.BlockSpec((2, TB), lambda i: (0, i)),
        out_shape=jax.ShapeDtypeStruct((2, B_pad), jnp.float32),
        compiler_params=pltpu.CompilerParams(
            # TODO(synk): on v7x, use CORE_PARALLEL (or pl.core_map) on the row
            # axis to shard row tiles across both TensorCores.
            dimension_semantics=("parallel",),
            vmem_limit_bytes=vmem_limit,
        ),
    )(mask2, x2, base2, wg, bg)

    return out[0, :B], out[1, :B]


if __name__ == "__main__":
    key = jax.random.PRNGKey(0)
    k_mask, k_x, k_base, k_w, k_b = jax.random.split(key, 5)

    # Small shapes: dataset N=8, batch=2, seq T=8, features F=32, classes C=4.
    N, B, T, F, C = 8, 2, 8, 32, 4

    # Deterministic mask init.  `reset_parameters` fills 0.5; we use a
    # deterministic perturbation spanning outside [0, 1] to exercise clamp().
    mask = jax.random.uniform(k_mask, (N, T, F), jnp.float32, -0.25, 1.25)

    x = jax.random.normal(k_x, (B, T, F), dtype=jnp.float32)
    baselines = 0.1 * jax.random.normal(k_base, (B, T, F), dtype=jnp.float32)

    # Deterministic synthetic forward_func parameters (linear head).
    W = 0.05 * jax.random.normal(k_w, (T * F, C), dtype=jnp.float32)
    bias = 0.05 * jax.random.normal(k_b, (1, C), dtype=jnp.float32)

    target = jnp.array([1, 3], dtype=jnp.int32)
    batch_idx = 1

    out1, out2 = mc_extremal_mask_forward(mask, x, baselines, batch_idx, B, W, bias, target)
    jax.block_until_ready((out1, out2))

    # Pure-JAX reference check.
    m_sl = jnp.clip(mask[B * batch_idx:B * (batch_idx + 1), :T, :], 0.0, 1.0)
    x1_ref = x * m_sl + baselines * (1.0 - m_sl)
    x2_ref = x * (1.0 - m_sl) + baselines * m_sl
    l1_ref = x1_ref.reshape(B, -1) @ W + bias
    l2_ref = x2_ref.reshape(B, -1) @ W + bias
    o1_ref = l1_ref[jnp.arange(B), target]
    o2_ref = l2_ref[jnp.arange(B), target]

    assert jnp.allclose(out1, o1_ref, atol=1e-5), (out1, o1_ref)
    assert jnp.allclose(out2, o2_ref, atol=1e-5), (out2, o2_ref)
    print("KERNEL_OK")
</pallas_src>

<mosaic_0001>
module attributes {stable_mosaic.version = 11 : i64} {
  func.func @_fused_kernel(%arg0: i32, %arg1: memref<8x256xf32, #tpu.memory_space<vmem>>, %arg2: memref<8x256xf32, #tpu.memory_space<vmem>>, %arg3: memref<8x256xf32, #tpu.memory_space<vmem>>, %arg4: memref<8x256xf32, #tpu.memory_space<vmem>>, %arg5: memref<1x8xf32, #tpu.memory_space<vmem>>, %arg6: memref<2x8xf32, #tpu.memory_space<vmem>>) attributes {dimension_semantics = [#tpu.dimension_semantics<parallel>], iteration_bounds = array<i64: 1>, scalar_prefetch = 0 : i64, scratch_operands = 0 : i64, tpu.core_type = #tpu.core_type<tc>, window_params = [{transform_indices = @transform_0, window_bounds = array<i64: 8, 256>}, {transform_indices = @transform_1, window_bounds = array<i64: 8, 256>}, {transform_indices = @transform_2, window_bounds = array<i64: 8, 256>}, {transform_indices = @transform_3, window_bounds = array<i64: 8, 256>}, {transform_indices = @transform_4, window_bounds = array<i64: 1, 8>}, {transform_indices = @transform_5, window_bounds = array<i64: 2, 8>}]} {
    %c0 = arith.constant 0 : index
    %c0_0 = arith.constant 0 : index
    %0 = vector.load %arg1[%c0, %c0_0] : memref<8x256xf32, #tpu.memory_space<vmem>>, vector<8x256xf32>
    %cst = arith.constant 0.000000e+00 : f32
    %cst_1 = arith.constant 1.000000e+00 : f32
    %1 = vector.broadcast %cst : f32 to vector<8x256xf32>
    %2 = arith.maximumf %1, %0 : vector<8x256xf32>
    %3 = vector.broadcast %cst_1 : f32 to vector<8x256xf32>
    %4 = arith.minimumf %3, %2 : vector<8x256xf32>
    %c0_2 = arith.constant 0 : index
    %c0_3 = arith.constant 0 : index
    %5 = vector.load %arg2[%c0_2, %c0_3] : memref<8x256xf32, #tpu.memory_space<vmem>>, vector<8x256xf32>
    %c0_4 = arith.constant 0 : index
    %c0_5 = arith.constant 0 : index
    %6 = vector.load %arg3[%c0_4, %c0_5] : memref<8x256xf32, #tpu.memory_space<vmem>>, vector<8x256xf32>
    %c0_6 = arith.constant 0 : index
    %c0_7 = arith.constant 0 : index
    %7 = vector.load %arg4[%c0_6, %c0_7] : memref<8x256xf32, #tpu.memory_space<vmem>>, vector<8x256xf32>
    %c0_8 = arith.constant 0 : index
    %c0_9 = arith.constant 0 : index
    %8 = vector.load %arg5[%c0_8, %c0_9] : memref<1x8xf32, #tpu.memory_space<vmem>>, vector<1x8xf32>
    %9 = vector.shape_cast %8 : vector<1x8xf32> to vector<8xf32>
    %cst_10 = arith.constant 1.000000e+00 : f32
    %10 = vector.broadcast %cst_10 : f32 to vector<8x256xf32>
    %11 = arith.subf %10, %4 : vector<8x256xf32>
    %12 = arith.mulf %5, %4 : vector<8x256xf32>
    %13 = arith.mulf %6, %11 : vector<8x256xf32>
    %14 = arith.addf %12, %13 : vector<8x256xf32>
    %15 = arith.mulf %5, %11 : vector<8x256xf32>
    %16 = arith.mulf %6, %4 : vector<8x256xf32>
    %17 = arith.addf %15, %16 : vector<8x256xf32>
    %18 = arith.mulf %14, %7 : vector<8x256xf32>
    %cst_11 = arith.constant dense<0.000000e+00> : vector<8xf32>
    %19 = vector.multi_reduction <add>, %18, %cst_11 [1] : vector<8x256xf32> to vector<8xf32>
    %20 = arith.addf %19, %9 : vector<8xf32>
    %21 = arith.mulf %17, %7 : vector<8x256xf32>
    %cst_12 = arith.constant dense<0.000000e+00> : vector<8xf32>
    %22 = vector.multi_reduction <add>, %21, %cst_12 [1] : vector<8x256xf32> to vector<8xf32>
    %23 = arith.addf %22, %9 : vector<8xf32>
    %c0_13 = arith.constant 0 : index
    %c0_14 = arith.constant 0 : index
    %24 = vector.load %arg6[%c0_13, %c0_14] : memref<2x8xf32, #tpu.memory_space<vmem>>, vector<1x8xf32>
    %25 = vector.shape_cast %24 : vector<1x8xf32> to vector<8xf32>
    %26 = vector.shape_cast %20 : vector<8xf32> to vector<1x8xf32>
    tpu.vector_store %arg6[%c0_13, %c0_14], %26 {strides = array<i32>} : memref<2x8xf32, #tpu.memory_space<vmem>>, vector<1x8xf32>,
    %c1 = arith.constant 1 : index
    %c0_15 = arith.constant 0 : index
    %27 = vector.load %arg6[%c1, %c0_15] : memref<2x8xf32, #tpu.memory_space<vmem>>, vector<1x8xf32>
    %28 = vector.shape_cast %27 : vector<1x8xf32> to vector<8xf32>
    %29 = vector.shape_cast %23 : vector<8xf32> to vector<1x8xf32>
    tpu.vector_store %arg6[%c1, %c0_15], %29 {strides = array<i32>} : memref<2x8xf32, #tpu.memory_space<vmem>>, vector<1x8xf32>,
    return
  }
  func.func @transform_0(%arg0: i32) -> (i32, i32) {
    %c0_i32 = arith.constant 0 : i32
    %c0_i32_0 = arith.constant 0 : i32
    return %arg0, %c0_i32 : i32, i32
  }
  func.func @transform_1(%arg0: i32) -> (i32, i32) {
    %c0_i32 = arith.constant 0 : i32
    %c0_i32_0 = arith.constant 0 : i32
    return %arg0, %c0_i32 : i32, i32
  }
  func.func @transform_2(%arg0: i32) -> (i32, i32) {
    %c0_i32 = arith.constant 0 : i32
    %c0_i32_0 = arith.constant 0 : i32
    return %arg0, %c0_i32 : i32, i32
  }
  func.func @transform_3(%arg0: i32) -> (i32, i32) {
    %c0_i32 = arith.constant 0 : i32
    %c0_i32_0 = arith.constant 0 : i32
    return %arg0, %c0_i32 : i32, i32
  }
  func.func @transform_4(%arg0: i32) -> (i32, i32) {
    %c0_i32 = arith.constant 0 : i32
    %c0_i32_0 = arith.constant 0 : i32
    return %c0_i32, %arg0 : i32, i32
  }
  func.func @transform_5(%arg0: i32) -> (i32, i32) {
    %c0_i32 = arith.constant 0 : i32
    %c0_i32_0 = arith.constant 0 : i32
    return %c0_i32, %arg0 : i32, i32
  }
}

</mosaic_0001>

<bundles_post_ra>
// kernel: tpu_custom_call.1
= control target key start
LH: loop header
LB: loop body
LE: loop exit
PB: predicated region body
PF: predicated region fallthrough
CT: control target
= control target key end

     0   :  { %10 = vsyncpa [#allocation3], 0  ;;  %s327_s0 = inlined_call_operand.hbm [shape: f32[8,256], index: 0, kind: input, shape index: {}]   ;;  %s328_s1 = inlined_call_operand.hbm [shape: f32[8,256], index: 1, kind: input, shape index: {}]   ;;  %s329_s2 = inlined_call_operand.hbm [shape: f32[8,256], index: 2, kind: input, shape index: {}]   ;;  %s330_s3 = inlined_call_operand.hbm [shape: f32[8,256], index: 3, kind: input, shape index: {}]   ;;  %s331_s4 = inlined_call_operand.vmem [shape: f32[1,8], index: 4, kind: input, shape index: {}]   ;;  %s332_s5 = inlined_call_operand.hbm [shape: f32[2,8], index: 5, kind: output, shape index: {}]  }
   0x1   :  { %11 = vsyncpa [#allocation6], 0 }
   0x2   :  { %12 = vsyncpa [#allocation9], 0 }
   0x3   :  { %13 = vsyncpa [#allocation4], 0  ;;  %s273_s18 = smov [#allocation5]   ;;  %s274_s20 = smov [#allocation2]  }
   0x4   :  { %s30_s19 = sshll.u32 %s273_s18, 4  ;;  %s20_s21 = sshll.u32 %s274_s20, 4  ;;  %s31_s19 = int_to_ptr.vmem [resolvable:$true] %s30_s19  ;;  %s21_s21 = int_to_ptr.vmem [resolvable:$true] %s20_s21 }
   0x5   :  { %s173_s22 = scalar_lea.vmem %s31_s19, 256  ;;  %p178_p1 = scmp.lt.s32.totalorder %s31_s19, %s31_s19 }
   0x6   :  { %p174_p0 = scmp.ne.s32.totalorder %s31_s19, %s173_s22  ;;  %p179_p2 = scmp.lt.s32.totalorder %s173_s22, %s173_s22 }
   0x8   :  { %p180_p3 = por %p179_p2, %p178_p1 }
   0xa   :  { %p181_p4 = pnand %p180_p3, %p174_p0 }
   0xc   :  { %184 = shalt.err (!%p181_p4)
}
   0xd   :  { %33 = dma.hbm_to_vmem [thread:$0]  %s328_s1, 256, %s31_s19, [#allocation6]  }
   0xe   :  { %s193_s25 = scalar_lea.vmem %s21_s21, 256  ;;  %p198_p6 = scmp.lt.s32.totalorder %s21_s21, %s21_s21 }
   0xf   :  { %p194_p5 = scmp.ne.s32.totalorder %s21_s21, %s193_s25  ;;  %p199_p7 = scmp.lt.s32.totalorder %s193_s25, %s193_s25 }
  0x11   :  { %p200_p8 = por %p199_p7, %p198_p6 }
  0x13   :  { %p201_p9 = pnand %p200_p8, %p194_p5 }
  0x15   :  { %204 = shalt.err (!%p201_p9)
}
  0x16   :  { %23 = dma.hbm_to_vmem [thread:$0]  %s327_s0, 256, %s21_s21, [#allocation3]  }
  0x17   :  { %s275_s28 = smov [#allocation7]   ;;  %s276_s30 = smov [#allocation8]  }
  0x18   :  { %s40_s29 = sshll.u32 %s275_s28, 4  ;;  %s50_s6 = sshll.u32 %s276_s30, 4  ;;  %s41_s29 = int_to_ptr.vmem [resolvable:$true] %s40_s29  ;;  %s51_s6 = int_to_ptr.vmem [resolvable:$true] %s50_s6 }
  0x19   :  { %s213_s7 = scalar_lea.vmem %s41_s29, 256  ;;  %p218_p11 = scmp.lt.s32.totalorder %s41_s29, %s41_s29 }
  0x1a   :  { %p214_p10 = scmp.ne.s32.totalorder %s41_s29, %s213_s7  ;;  %p219_p12 = scmp.lt.s32.totalorder %s213_s7, %s213_s7 }
  0x1c   :  { %p220_p13 = por %p219_p12, %p218_p11 }
  0x1e   :  { %p221_p0 = pnand %p220_p13, %p214_p10 }
  0x20   :  { %224 = shalt.err (!%p221_p0)
}
  0x21   :  { %43 = dma.hbm_to_vmem [thread:$0]  %s329_s2, 256, %s41_s29, [#allocation6]  }
  0x22   :  { %s233_s9 = scalar_lea.vmem %s51_s6, 256  ;;  %p238_p2 = scmp.lt.s32.totalorder %s51_s6, %s51_s6 }
  0x23   :  { %p234_p1 = scmp.ne.s32.totalorder %s51_s6, %s233_s9  ;;  %p239_p3 = scmp.lt.s32.totalorder %s233_s9, %s233_s9 }
  0x25   :  { %p240_p4 = por %p239_p3, %p238_p2 }
  0x27   :  { %p241_p5 = pnand %p240_p4, %p234_p1 }
  0x29   :  { %244 = shalt.err (!%p241_p5)
}
  0x2a   :  { %53 = dma.hbm_to_vmem [thread:$0]  %s330_s3, 256, %s51_s6, [#allocation9]  }
  0x2b   :  { %265 = dma.done.wait [#allocation3], 256  }
  0x2c   :  { %266 = vsyncadd [#allocation3], 4294967040 }
  0x2d   :  { %267 = dma.done.wait [#allocation6], 512  }
  0x2e   :  { %268 = vsyncadd [#allocation6], 4294966784 }
  0x2f   :  { %269 = dma.done.wait [#allocation9], 256  }
  0x30   :  { %270 = vsyncadd [#allocation9], 4294967040  ;;  %v68_v0 = vld [vmem:[#allocation2] sm:$0xff]  ;;  %v69_v1 = vld [vmem:[#allocation2 + $0x8] sm:$0xff]  ;;  %v277_v33 = vmov 0   ;;  %v120_v39 = vlaneseq  ;;  %vm127_vm0 = vcmask 57344  }
  0x31   :  { %v70_v2 = vmax.f32 %v68_v0, 0.0  ;;  %v71_v3 = vmax.f32 %v69_v1, 0.0  ;;  %v74_v4 = vld [vmem:[#allocation5] sm:$0xff]  ;;  %v75_v5 = vld [vmem:[#allocation5 + $0x8] sm:$0xff]  ;;  %v156_v6 = vld [vmem:[%s331_s4] ss:$0 sm:$0xff]  ;;  %163 = vset.pattern.permute.xlu1 %v277_v33  ;;  %164 = vset.pattern.permute.xlu0 %v277_v33 }
  0x32   :  { %106 = vbcast.lane.b32.xlu1 %v156_v6, 256  ;;  %v76_v9 = vld [vmem:[#allocation7] sm:$0xff]  ;;  %v77_v10 = vld [vmem:[#allocation7 + $0x8] sm:$0xff]  ;;  %v78_v21 = vld [vmem:[#allocation8] sm:$0xff]  ;;  %v121_v40 = vand.u32 127, %v120_v39  ;;  %v123_v41 = vshrl.u32 %v120_v39, 7 }
  0x33   :  { %v72_v7 = vmin.f32 %v70_v2, 1.0  ;;  %v73_v8 = vmin.f32 %v71_v3, 1.0  ;;  %v79_v22 = vld [vmem:[#allocation8 + $0x8] sm:$0xff]  ;;  %s278_s3 = smov [#allocation10]  }
  0x34   :  { %v124_v42 = vsub.s32 %v121_v40, %v123_v41  ;;  %s145_s4 = sshll.u32 %s278_s3, 4  ;;  %s146_s4 = int_to_ptr.vmem [resolvable:$true] %s145_s4 }
  0x35   :  { %v81_v11 = vsub.f32 1.0, %v72_v7  ;;  %v82_v12 = vsub.f32 1.0, %v73_v8  ;;  %v83_v13 = vmul.f32 %v74_v4, %v72_v7  ;;  %v84_v14 = vmul.f32 %v75_v5, %v73_v8  ;;  %s245_s12 = scalar_lea.vmem %s146_s4, 32  ;;  %p250_p7 = scmp.lt.s32.totalorder %s146_s4, %s146_s4 }
  0x36   :  { %v91_v15 = vmul.f32 %v76_v9, %v72_v7  ;;  %v92_v16 = vmul.f32 %v77_v10, %v73_v8  ;;  %p246_p6 = scmp.ne.s32.totalorder %s146_s4, %s245_s12  ;;  %p251_p8 = scmp.lt.s32.totalorder %s245_s12, %s245_s12 }
  0x37   :  { %v85_v17 = vmul.f32 %v81_v11, %v76_v9  ;;  %v86_v18 = vmul.f32 %v82_v12, %v77_v10  ;;  %v89_v19 = vmul.f32 %v81_v11, %v74_v4  ;;  %v90_v20 = vmul.f32 %v82_v12, %v75_v5 }
  0x38   :  { %p252_p9 = por %p251_p8, %p250_p7 }
  0x39   :  { %v87_v23 = vadd.f32 %v85_v17, %v83_v13  ;;  %v88_v24 = vadd.f32 %v86_v18, %v84_v14  ;;  %v93_v25 = vadd.f32 %v91_v15, %v89_v19  ;;  %v94_v26 = vadd.f32 %v92_v16, %v90_v20 }
  0x3a   :  { %p253_p10 = pnand %p252_p9, %p246_p6 }
  0x3b   :  { %v95_v27 = vmul.f32 %v87_v23, %v78_v21  ;;  %v96_v28 = vmul.f32 %v88_v24, %v79_v22  ;;  %v110_v29 = vmul.f32 %v93_v25, %v78_v21  ;;  %v111_v30 = vmul.f32 %v94_v26, %v79_v22 }
  0x3d   :  { %v97_v31 = vadd.f32 %v96_v28, %v95_v27  ;;  %v112_v32 = vadd.f32 %v111_v30, %v110_v29 }
  0x3f   :  { %98 = vadd.xlane.f32.xlu0 %v97_v31 }
  0x43   :  { %113 = vadd.xlane.f32.xlu0 %v112_v32 }
  0xa4   :  { %v107_v34 = vpop.permute.xlu1 %106 }
  0xc8   :  { %v99_v35 = vpop.xlane.xlu0 %98 }
  0xc9   :  { %v109_v36 = vadd.f32 %v107_v34, %v99_v35 }
  0xcb   :  { %118 = vperm.xlu1 %163, %v109_v36  }
  0xcc   :  { %v114_v37 = vpop.xlane.xlu0 %113 }
  0xcd   :  { %v115_v38 = vadd.f32 %v114_v37, %v107_v34 }
  0xcf   :  { %131 = vperm.xlu0 %164, %v115_v38  }
 0x146   :  { %v119_v43 = vpop.permute.xlu1 %118 }
 0x147   :  { %v125_v44 = vrot.slane %v119_v43, %v124_v42 }
 0x149   :  { %128 = vst.msk [vmem:[#allocation10] sm:$0x1] %vm127_vm0, %v125_v44 }
 0x14a   :  { %v132_v45 = vpop.permute.xlu0 %131 }
 0x14b   :  { %v136_v46 = vrot.slane %v132_v45, %v124_v42 }
 0x14d   :  { %138 = vst.msk [vmem:[#allocation10 + $0x1] sm:$0x1] %vm127_vm0, %v136_v46 }
 0x14e   :  { %256 = shalt.err (!%p253_p10)
}
 0x14f   :  { %148 = dma.vmem_to_hbm [thread:$0]  %s146_s4, 32, %s332_s5, [#allocation4]  }
 0x150   :  { %271 = dma.done.wait [#allocation4], 32  }
 0x151   :  { %272 = vsyncadd [#allocation4], 4294967264 }
 0x152   :  { %152 = vsyncpa [#allocation3], 1 }
 0x153   :  { %153 = vsyncpa [#allocation6], 1 }
 0x154   :  { %154 = vsyncpa [#allocation9], 1 }
 0x155   :  { %155 = vsyncpa [#allocation4], 1 }

</bundles_post_ra>
